<compile_context>
chip_gen: v6e
topology: v6e:2x2x1
jax: 0.10.0
libtpu: 0.0.40
codegen_flags: <defaults>
</compile_context>

<pallas_src>
import jax
import jax.numpy as jnp
from jax.experimental import pallas as pl
from jax.experimental.pallas import tpu as pltpu


def _make_kernel(L, l_tile, needs_mask):
    def kernel(x_ref, w1_ref, w2_ref, o_ref, sum_acc, max_acc):
        k = pl.program_id(1)
        nk = pl.num_programs(1)

        x = x_ref[...].astype(jnp.float32)          # (bt, lt, C), f32 accum path

        if needs_mask:
            # Mask rows beyond L (partial last tile): 0 for sum, -inf for max.
            row = jax.lax.broadcasted_iota(jnp.int32, (l_tile, 1), 0) + k * l_tile
            valid = (row < L)[None, :, :]           # (1, lt, 1)
            x_sum = jnp.where(valid, x, 0.0)
            x_max = jnp.where(valid, x, -jnp.inf)
        else:
            x_sum = x
            x_max = x

        part_sum = jnp.sum(x_sum, axis=1)           # (bt, C)
        part_max = jnp.max(x_max, axis=1)           # (bt, C)

        @pl.when(k == 0)
        def _():
            sum_acc[...] = part_sum
            max_acc[...] = part_max

        @pl.when(k > 0)
        def _():
            sum_acc[...] = sum_acc[...] + part_sum
            max_acc[...] = jnp.maximum(max_acc[...], part_max)

        @pl.when(k == nk - 1)
        def _():
            bt = o_ref.shape[0]
            avg = sum_acc[...] * jnp.float32(1.0 / L)   # compile-time reciprocal
            mx = max_acc[...]
            # One fused MLP pass over the stacked (2*bt, C) pooled rows.
            v = jnp.concatenate([avg, mx], axis=0)      # (2*bt, C)
            h = jnp.dot(v, w1_ref[...], preferred_element_type=jnp.float32)
            h = jnp.maximum(h, 0.0)                     # ReLU
            y = jnp.dot(h, w2_ref[...], preferred_element_type=jnp.float32)
            out = jax.nn.sigmoid(y[:bt] + y[bt:])       # (bt, C)
            o_ref[...] = out.astype(o_ref.dtype)

    return kernel


def _choose_tiles(B, L, C, itemsize):
    # Batch tile: full B if small; else a multiple of 8 (output block rule).
    b_tile = B if B <= 8 else 8
    # Target ~2 MiB per x block (double-buffered -> ~4 MiB in VMEM).
    target = 2 * 1024 * 1024
    max_l = max(8, target // max(1, b_tile * C * itemsize))
    max_l = max(8, (max_l // 8) * 8)                # multiple of 8
    l_tile = L if L <= max_l else min(512, max_l)   # full-extent or 8-aligned
    return b_tile, l_tile


def channel_attention(x, w1, w2, *, b_tile=None, l_tile=None):
    """x: (B, L, C); w1: (C, H); w2: (H, C) -> (B, 1, C)."""
    B, L, C = x.shape
    H = w1.shape[1]
    itemsize = jnp.dtype(x.dtype).itemsize

    auto_b, auto_l = _choose_tiles(B, L, C, itemsize)
    b_tile = auto_b if b_tile is None else b_tile
    l_tile = auto_l if l_tile is None else l_tile
    assert l_tile == L or l_tile % 8 == 0, "l_tile must be 8-aligned or full L"

    needs_mask = (L % l_tile) != 0
    grid = (pl.cdiv(B, b_tile), pl.cdiv(L, l_tile))  # L (reduction) innermost

    cost = pl.CostEstimate(
        flops=2 * B * L * C + 8 * B * C * H + 4 * B * C,
        transcendentals=B * C,
        bytes_accessed=B * L * C * itemsize
        + 2 * C * H * jnp.dtype(w1.dtype).itemsize
        + B * C * itemsize,
    )

    out = pl.pallas_call(
        _make_kernel(L, l_tile, needs_mask),
        out_shape=jax.ShapeDtypeStruct((B, C), x.dtype),
        grid=grid,
        in_specs=[
            pl.BlockSpec((b_tile, l_tile, C), lambda b, k: (b, k, 0)),
            pl.BlockSpec((C, H), lambda b, k: (0, 0)),   # weights stay resident
            pl.BlockSpec((H, C), lambda b, k: (0, 0)),
        ],
        out_specs=pl.BlockSpec((b_tile, C), lambda b, k: (b, 0)),
        scratch_shapes=[
            pltpu.VMEM((b_tile, C), jnp.float32),        # running sum
            pltpu.VMEM((b_tile, C), jnp.float32),        # running max
        ],
        compiler_params=pltpu.CompilerParams(
            dimension_semantics=("parallel", "arbitrary"),
            vmem_limit_bytes=32 * 1024 * 1024,
        ),
        cost_estimate=cost,
    )(x, w1, w2)
    return out[:, None, :]  # matches out.unsqueeze(1)


def channel_attention_ref(x, w1, w2):
    avg = jnp.mean(x, axis=1)
    mx = jnp.max(x, axis=1)

    def fc(v):
        return jnp.maximum(v @ w1, 0.0) @ w2

    return jax.nn.sigmoid(fc(avg) + fc(mx))[:, None, :]


if __name__ == "__main__":
    key = jax.random.PRNGKey(0)

    # --- Test 1: shapes implied by the module (single L tile path) ---------
    B, L, C = 2, 8, 64
    H = C // 16  # reduction_ratio = 16
    kx, k1, k2, key = jax.random.split(key, 4)
    x = jax.random.normal(kx, (B, L, C), dtype=jnp.float32)
    w1 = jax.random.normal(k1, (C, H), dtype=jnp.float32) * (1.0 / jnp.sqrt(C))
    w2 = jax.random.normal(k2, (H, C), dtype=jnp.float32) * (1.0 / jnp.sqrt(H))

    out = jax.block_until_ready(channel_attention(x, w1, w2))
    ref = channel_attention_ref(x, w1, w2)
    assert out.shape == (B, 1, C), out.shape
    assert jnp.allclose(out, ref, atol=1e-5, rtol=1e-5), "mismatch (test 1)"

    # --- Test 2: multi-tile L with a partial (masked) last tile ------------
    B2, L2, C2 = 2, 150, 128
    H2 = C2 // 16
    kx, k1, k2, key = jax.random.split(key, 4)
    x2 = jax.random.normal(kx, (B2, L2, C2), dtype=jnp.float32)
    w1_2 = jax.random.normal(k1, (C2, H2), dtype=jnp.float32) * (1.0 / jnp.sqrt(C2))
    w2_2 = jax.random.normal(k2, (H2, C2), dtype=jnp.float32) * (1.0 / jnp.sqrt(H2))

    out2 = jax.block_until_ready(
        channel_attention(x2, w1_2, w2_2, l_tile=64))   # 3 L tiles, last partial
    ref2 = channel_attention_ref(x2, w1_2, w2_2)
    assert out2.shape == (B2, 1, C2), out2.shape
    assert jnp.allclose(out2, ref2, atol=1e-5, rtol=1e-5), "mismatch (test 2)"

    print("KERNEL_OK")
</pallas_src>

<mosaic_0001>
module attributes {stable_mosaic.version = 11 : i64} {
  func.func @kernel(%arg0: i32, %arg1: i32, %arg2: memref<2x8x64xf32, #tpu.memory_space<vmem>>, %arg3: memref<64x4xf32, #tpu.memory_space<vmem>>, %arg4: memref<4x64xf32, #tpu.memory_space<vmem>>, %arg5: memref<2x64xf32, #tpu.memory_space<vmem>>, %arg6: memref<2x64xf32, #tpu.memory_space<vmem>>, %arg7: memref<2x64xf32, #tpu.memory_space<vmem>>) attributes {dimension_semantics = [#tpu.dimension_semantics<parallel>, #tpu.dimension_semantics<arbitrary>], iteration_bounds = array<i64: 1, 1>, scalar_prefetch = 0 : i64, scratch_operands = 2 : i64, tpu.core_type = #tpu.core_type<tc>, window_params = [{transform_indices = @transform_0, window_bounds = array<i64: 2, 8, 64>}, {pipeline_mode = #tpu.pipeline_mode<synchronous>, transform_indices = @transform_1, window_bounds = array<i64: 64, 4>}, {pipeline_mode = #tpu.pipeline_mode<synchronous>, transform_indices = @transform_2, window_bounds = array<i64: 4, 64>}, {transform_indices = @transform_3, window_bounds = array<i64: 2, 64>}]} {
    %c0 = arith.constant 0 : index
    %c0_0 = arith.constant 0 : index
    %c0_1 = arith.constant 0 : index
    %0 = vector.load %arg2[%c0, %c0_0, %c0_1] : memref<2x8x64xf32, #tpu.memory_space<vmem>>, vector<2x8x64xf32>
    %cst = arith.constant dense<0.000000e+00> : vector<2x64xf32>
    %1 = vector.multi_reduction <add>, %0, %cst [1] : vector<2x8x64xf32> to vector<2x64xf32>
    %cst_2 = arith.constant dense<0xFF800000> : vector<2x64xf32>
    %2 = vector.multi_reduction <maximumf>, %0, %cst_2 [1] : vector<2x8x64xf32> to vector<2x64xf32>
    %c0_i32 = arith.constant 0 : i32
    %3 = arith.cmpi eq, %arg1, %c0_i32 : i32
    %4 = arith.extui %3 : i1 to i32
    %c0_i32_3 = arith.constant 0 : i32
    %5 = arith.cmpi ne, %4, %c0_i32_3 : i32
    scf.if %5 {
      %c0_8 = arith.constant 0 : index
      %c0_9 = arith.constant 0 : index
      %12 = vector.load %arg6[%c0_8, %c0_9] : memref<2x64xf32, #tpu.memory_space<vmem>>, vector<2x64xf32>
      tpu.vector_store %arg6[%c0_8, %c0_9], %1 {strides = array<i32>} : memref<2x64xf32, #tpu.memory_space<vmem>>, vector<2x64xf32>,
      %c0_10 = arith.constant 0 : index
      %c0_11 = arith.constant 0 : index
      %13 = vector.load %arg7[%c0_10, %c0_11] : memref<2x64xf32, #tpu.memory_space<vmem>>, vector<2x64xf32>
      tpu.vector_store %arg7[%c0_10, %c0_11], %2 {strides = array<i32>} : memref<2x64xf32, #tpu.memory_space<vmem>>, vector<2x64xf32>,
    } else {
    }
    %c0_i32_4 = arith.constant 0 : i32
    %6 = arith.cmpi sgt, %arg1, %c0_i32_4 : i32
    %7 = arith.extui %6 : i1 to i32
    %c0_i32_5 = arith.constant 0 : i32
    %8 = arith.cmpi ne, %7, %c0_i32_5 : i32
    scf.if %8 {
      %c0_8 = arith.constant 0 : index
      %c0_9 = arith.constant 0 : index
      %12 = vector.load %arg6[%c0_8, %c0_9] : memref<2x64xf32, #tpu.memory_space<vmem>>, vector<2x64xf32>
      %13 = arith.addf %12, %1 : vector<2x64xf32>
      %c0_10 = arith.constant 0 : index
      %c0_11 = arith.constant 0 : index
      %14 = vector.load %arg6[%c0_10, %c0_11] : memref<2x64xf32, #tpu.memory_space<vmem>>, vector<2x64xf32>
      tpu.vector_store %arg6[%c0_10, %c0_11], %13 {strides = array<i32>} : memref<2x64xf32, #tpu.memory_space<vmem>>, vector<2x64xf32>,
      %c0_12 = arith.constant 0 : index
      %c0_13 = arith.constant 0 : index
      %15 = vector.load %arg7[%c0_12, %c0_13] : memref<2x64xf32, #tpu.memory_space<vmem>>, vector<2x64xf32>
      %16 = arith.maximumf %15, %2 : vector<2x64xf32>
      %c0_14 = arith.constant 0 : index
      %c0_15 = arith.constant 0 : index
      %17 = vector.load %arg7[%c0_14, %c0_15] : memref<2x64xf32, #tpu.memory_space<vmem>>, vector<2x64xf32>
      tpu.vector_store %arg7[%c0_14, %c0_15], %16 {strides = array<i32>} : memref<2x64xf32, #tpu.memory_space<vmem>>, vector<2x64xf32>,
    } else {
    }
    %c0_i32_6 = arith.constant 0 : i32
    %9 = arith.cmpi eq, %arg1, %c0_i32_6 : i32
    %10 = arith.extui %9 : i1 to i32
    %c0_i32_7 = arith.constant 0 : i32
    %11 = arith.cmpi ne, %10, %c0_i32_7 : i32
    scf.if %11 {
      %c0_8 = arith.constant 0 : index
      %c0_9 = arith.constant 0 : index
      %12 = vector.load %arg6[%c0_8, %c0_9] : memref<2x64xf32, #tpu.memory_space<vmem>>, vector<2x64xf32>
      %cst_10 = arith.constant 1.250000e-01 : f32
      %13 = vector.broadcast %cst_10 : f32 to vector<2x64xf32>
      %14 = arith.mulf %12, %13 : vector<2x64xf32>
      %c0_11 = arith.constant 0 : index
      %c0_12 = arith.constant 0 : index
      %15 = vector.load %arg7[%c0_11, %c0_12] : memref<2x64xf32, #tpu.memory_space<vmem>>, vector<2x64xf32>
      %16 = tpu.concatenate %14, %15 in 0 : vector<2x64xf32>, vector<2x64xf32> -> vector<4x64xf32>
      %c0_13 = arith.constant 0 : index
      %c0_14 = arith.constant 0 : index
      %17 = vector.load %arg3[%c0_13, %c0_14] : memref<64x4xf32, #tpu.memory_space<vmem>>, vector<64x4xf32>
      %cst_15 = arith.constant dense<0.000000e+00> : vector<4x4xf32>
      %18 = tpu.matmul %16, %17, %cst_15 {dimension_numbers = #tpu.dot_dimension_numbers<[1], [0], [0], [1], [0, 0, 1, 1], [], []>} : vector<4x64xf32>, vector<64x4xf32>, vector<4x4xf32> -> vector<4x4xf32>
      %cst_16 = arith.constant 0.000000e+00 : f32
      %19 = vector.broadcast %cst_16 : f32 to vector<4x4xf32>
      %20 = arith.maximumf %18, %19 : vector<4x4xf32>
      %c0_17 = arith.constant 0 : index
      %c0_18 = arith.constant 0 : index
      %21 = vector.load %arg4[%c0_17, %c0_18] : memref<4x64xf32, #tpu.memory_space<vmem>>, vector<4x64xf32>
      %cst_19 = arith.constant dense<0.000000e+00> : vector<4x64xf32>
      %22 = tpu.matmul %20, %21, %cst_19 {dimension_numbers = #tpu.dot_dimension_numbers<[1], [0], [0], [1], [0, 0, 1, 1], [], []>} : vector<4x4xf32>, vector<4x64xf32>, vector<4x64xf32> -> vector<4x64xf32>
      %23 = vector.extract_strided_slice %22 {offsets = [0, 0], sizes = [2, 64], strides = [1, 1]} : vector<4x64xf32> to vector<2x64xf32>
      %24 = vector.extract_strided_slice %22 {offsets = [2, 0], sizes = [2, 64], strides = [1, 1]} : vector<4x64xf32> to vector<2x64xf32>
      %25 = arith.addf %23, %24 : vector<2x64xf32>
      %26 = arith.negf %25 : vector<2x64xf32>
      %27 = math.exp %26 : vector<2x64xf32>
      %cst_20 = arith.constant 1.000000e+00 : f32
      %28 = vector.broadcast %cst_20 : f32 to vector<2x64xf32>
      %29 = arith.addf %28, %27 : vector<2x64xf32>
      %30 = arith.divf %28, %29 : vector<2x64xf32>
      %c0_21 = arith.constant 0 : index
      %c0_22 = arith.constant 0 : index
      %31 = vector.load %arg5[%c0_21, %c0_22] : memref<2x64xf32, #tpu.memory_space<vmem>>, vector<2x64xf32>
      tpu.vector_store %arg5[%c0_21, %c0_22], %30 {strides = array<i32>} : memref<2x64xf32, #tpu.memory_space<vmem>>, vector<2x64xf32>,
    } else {
    }
    return
  }
  func.func @transform_0(%arg0: i32, %arg1: i32) -> (i32, i32, i32) {
    %c0_i32 = arith.constant 0 : i32
    %c0_i32_0 = arith.constant 0 : i32
    return %arg0, %arg1, %c0_i32 : i32, i32, i32
  }
  func.func @transform_1(%arg0: i32, %arg1: i32) -> (i32, i32) {
    %c0_i32 = arith.constant 0 : i32
    %c0_i32_0 = arith.constant 0 : i32
    %c0_i32_1 = arith.constant 0 : i32
    return %c0_i32, %c0_i32_0 : i32, i32
  }
  func.func @transform_2(%arg0: i32, %arg1: i32) -> (i32, i32) {
    %c0_i32 = arith.constant 0 : i32
    %c0_i32_0 = arith.constant 0 : i32
    %c0_i32_1 = arith.constant 0 : i32
    return %c0_i32, %c0_i32_0 : i32, i32
  }
  func.func @transform_3(%arg0: i32, %arg1: i32) -> (i32, i32) {
    %c0_i32 = arith.constant 0 : i32
    %c0_i32_0 = arith.constant 0 : i32
    return %arg0, %c0_i32 : i32, i32
  }
}

</mosaic_0001>

<bundles_post_ra>
// kernel: tpu_custom_call.1
= control target key start
LH: loop header
LB: loop body
LE: loop exit
PB: predicated region body
PF: predicated region fallthrough
CT: control target
= control target key end

     0   :  { %vm17_vm0 = vcmask 523264   ;;  %v348_v1 = vmov 0.0   ;;  %vm349_vm1 = vmmov 0   ;;  %s415_s0 = inlined_call_operand.vmem [shape: f32[2,8,64], index: 0, kind: input, shape index: {}]   ;;  %s416_s1 = inlined_call_operand.vmem [shape: f32[64,4], index: 1, kind: input, shape index: {}]   ;;  %s417_s2 = inlined_call_operand.vmem [shape: f32[4,64], index: 2, kind: input, shape index: {}]   ;;  %s418_s3 = inlined_call_operand.hbm [shape: f32[2,64], index: 3, kind: output, shape index: {}]  }
   0x1   :  { %v100_v0 = vld [vmem:[%s416_s1 + $0x38] sm:$0xff]  ;;  %295 = vmatprep.subr.mxu0 %v348_v1  ;;  %v99_v2 = vld [vmem:[%s416_s1 + $0x30] sm:$0xff]  ;;  %311 = vmatprep.mubr.msk.f32.mxu0 %vm349_vm1, %v348_v1  ;;  %v15_v3 = vld [vmem:[%s415_s0] sm:$0xff] }
   0x2   :  { %296 = vmatpush3.msra.mxu0 %v100_v0  ;;  %314 = vmatprep.subr.mxu1 %v348_v1  ;;  %v98_v4 = vld [vmem:[%s416_s1 + $0x28] sm:$0xff]  ;;  %v18_v6 = vsel %vm17_vm0, %v15_v3, 0.0  ;;  %v32_v7 = vsel %vm17_vm0, %v15_v3, -inf }
   0x3   :  { %297 = vmatprep.subr.mxu0 %v348_v1  ;;  %v16_v5 = vld [vmem:[%s415_s0 + $0x8] sm:$0xff]  ;;  %316 = vmatprep.mubr.msk.f32.mxu1 %vm349_vm1, %v348_v1 }
   0x4   :  { %8 = vsyncpa [#allocation5], 0  ;;  %298 = vmatpush3.msra.mxu0 %v99_v2  ;;  %v19_v8 = vrot.slane %v18_v6, 4  ;;  %v25_v9 = vsel %vm17_vm0, %v16_v5, 0.0  ;;  %v33_v10 = vrot.slane %v32_v7, 4  ;;  %v39_v11 = vsel %vm17_vm0, %v16_v5, -inf }
   0x5   :  { %299 = vmatprep.subr.mxu0 %v348_v1  ;;  %v97_v12 = vld [vmem:[%s416_s1 + $0x20] sm:$0xff]  ;;  %v26_v13 = vrot.slane %v25_v9, 4  ;;  %v40_v14 = vrot.slane %v39_v11, 4  ;;  %v96_v17 = vld [vmem:[%s416_s1 + $0x18] sm:$0xff]  ;;  %v95_v22 = vld [vmem:[%s416_s1 + $0x10] sm:$0xff]  ;;  %vm52_vm2 = vcmask 1041409  }
   0x6   :  { %300 = vmatpush3.msra.mxu0 %v98_v4  ;;  %v20_v15 = vadd.f32 %v19_v8, %v18_v6  ;;  %v34_v16 = vmax.f32 %v32_v7, %v33_v10  ;;  %v94_v27 = vld [vmem:[%s416_s1 + $0x8] sm:$0xff]  ;;  %v93_v32 = vld [vmem:[%s416_s1] sm:$0xff]  ;;  %vm55_vm3 = vcmask 517120   ;;  %vm91_vm4 = vcmask 1041408   ;;  %s350_s5 = smov [#allocation4]  }
   0x7   :  { %301 = vmatprep.subr.mxu0 %v348_v1  ;;  %v27_v18 = vadd.f32 %v26_v13, %v25_v9  ;;  %v41_v19 = vmax.f32 %v39_v11, %v40_v14  ;;  %v175_v46 = vld [vmem:[%s417_s2] sm:$0xf]  ;;  %vm180_vm5 = vcmask 1043456   ;;  %vm176_vm6 = vcmask 31744   ;;  %s272_s6 = sshll.u32 %s350_s5, 4  ;;  %s273_s6 = int_to_ptr.vmem [resolvable:$true] %s272_s6 }
   0x8   :  { %302 = vmatpush3.msra.mxu0 %v97_v12  ;;  %v21_v20 = vrot.slane %v20_v15, 2  ;;  %v35_v21 = vrot.slane %v34_v16, 2  ;;  %315 = vmatpush3.msk.msra.mxu1 %vm180_vm5, %v175_v46  ;;  %s326_s2 = scalar_lea.vmem %s273_s6, 32  ;;  %p331_p1 = scmp.lt.s32.totalorder %s273_s6, %s273_s6 }
   0x9   :  { %303 = vmatprep.subr.mxu0 %v348_v1  ;;  %v28_v23 = vrot.slane %v27_v18, 2  ;;  %v42_v24 = vrot.slane %v41_v19, 2  ;;  %p327_p0 = scmp.ne.s32.totalorder %s273_s6, %s326_s2  ;;  %p332_p2 = scmp.lt.s32.totalorder %s326_s2, %s326_s2 }
   0xa   :  { %304 = vmatpush3.msra.mxu0 %v96_v17  ;;  %v22_v25 = vadd.f32 %v21_v20, %v20_v15  ;;  %v36_v26 = vmax.f32 %v34_v16, %v35_v21 }
   0xb   :  { %305 = vmatprep.subr.mxu0 %v348_v1  ;;  %v29_v28 = vadd.f32 %v28_v23, %v27_v18  ;;  %v43_v29 = vmax.f32 %v41_v19, %v42_v24  ;;  %p333_p3 = por %p332_p2, %p331_p1 }
   0xc   :  { %306 = vmatpush3.msra.mxu0 %v95_v22  ;;  %v23_v30 = vrot.slane %v22_v25, 1  ;;  %v37_v31 = vrot.slane %v36_v26, 1 }
   0xd   :  { %307 = vmatprep.subr.mxu0 %v348_v1  ;;  %v30_v33 = vrot.slane %v29_v28, 1  ;;  %v44_v34 = vrot.slane %v43_v29, 1  ;;  %p334_p4 = pnand %p333_p3, %p327_p0 }
   0xe   :  { %308 = vmatpush3.msra.mxu0 %v94_v27  ;;  %v24_v35 = vadd.f32 %v23_v30, %v22_v25  ;;  %v38_v36 = vmax.f32 %v36_v26, %v37_v31 }
   0xf   :  { %309 = vmatprep.subr.mxu0 %v348_v1  ;;  %v31_v37 = vadd.f32 %v30_v33, %v29_v28  ;;  %v45_v38 = vmax.f32 %v43_v29, %v44_v34 }
  0x10   :  { %310 = vmatpush3.msra.mxu0 %v93_v32 }
  0x11   :  { %v53_v39 = vsel %vm52_vm2, %v31_v37, %v24_v35  ;;  %v59_v40 = vsel %vm52_vm2, %v45_v38, %v38_v36 }
  0x12   :  { %56 = vst.msk [vmem:[#allocation2] sm:$0x3] %vm55_vm3, %v53_v39  ;;  %61 = vst.msk [vmem:[#allocation3] sm:$0x3] %vm55_vm3, %v59_v40 }
  0x19   :  { %v85_v41 = vld [vmem:[#allocation2] sm:$0x3]  ;;  %v87_v42 = vld [vmem:[#allocation3] sm:$0x3] }
  0x1a   :  { %v86_v43 = vmul.f32 0.125, %v85_v41  ;;  %v89_v44 = vrot.slane %v87_v42, 6 }
  0x1c   :  { %v92_v45 = vsel %vm91_vm4, %v86_v43, %v89_v44 }
  0x1d   :  { %312 = vmatmul.mubr.msk.f32.vlgmr.msra.gmra.mxu0 %vm17_vm0, %v92_v45 }
  0xdd   :  { %v170_v47 = vpop.f32.mrf.mxu0 }
  0xde   :  { %v174_v48 = vmax.f32 %v170_v47, 0.0 }
  0xdf   :  { %v313_v49 = vpop.f32.mrf.mxu0 }
  0xe0   :  { %317 = vmatmul.mubr.msk.f32.vlgmr.msra.gmra.mxu1 %vm176_vm6, %v174_v48 }
 0x1a0   :  { %v250_v50 = vpop.f32.mrf.mxu1 }
 0x1a1   :  { %v255_v51 = vrot.slane %v250_v50, 2 }
 0x1a2   :  { %v318_v52 = vpop.f32.mrf.mxu1 }
 0x1a3   :  { %v257_v53 = vadd.f32 %v255_v51, %v250_v50 }
 0x1a5   :  { %v283_v54 = vmul.f32 -1.442695, %v257_v53 }
 0x1a7   :  { %322 = vpow2.f32 %v283_v54 }
 0x1b4   :  { %v323_v55 = vpop.eup %322 }
 0x1b5   :  { %v261_v56 = vadd.f32 1.0, %v323_v55 }
 0x1b7   :  { %324 = vrcp.f32 %v261_v56 }
 0x1c4   :  { %v325_v57 = vpop.eup %324 }
 0x1c5   :  { %265 = vst.msk [vmem:[#allocation4] sm:$0x3] %vm55_vm3, %v325_v57 }
 0x1c6   :  { %337 = shalt.err (!%p334_p4)
}
 0x1c7   :  { %275 = dma.vmem_to_hbm [thread:$0]  %s273_s6, 32, %s418_s3, [#allocation5]  }
 0x1c8   :  { %346 = dma.done.wait [#allocation5], 32  }
 0x1c9   :  { %347 = vsyncadd [#allocation5], 4294967264 }
 0x1ca   :  { %279 = vsyncpa [#allocation5], 1 }

</bundles_post_ra>
